<compile_context>
chip_gen: v6e
topology: v6e:2x2x1
jax: 0.10.0
libtpu: 0.0.40
codegen_flags: <defaults>
</compile_context>

<pallas_src>
import jax
import jax.numpy as jnp
from jax import lax
from jax.experimental import pallas as pl
from jax.experimental.pallas import tpu as pltpu


def _round_up(a, m):
    return (a + m - 1) // m * m


def actor_kernel(x_ref, w1_ref, b1_ref, w2_ref, b2_ref, w3t_ref, b3t_ref, ot_ref):
    # Layer 1: linear + ReLU  (MXU matmul, f32 accumulate)
    h1 = jnp.dot(x_ref[...], w1_ref[...], preferred_element_type=jnp.float32)
    h1 = jnp.maximum(h1 + b1_ref[...].astype(jnp.float32), 0.0)

    # Layer 2: linear + ReLU  (cast activations to weight dtype for bf16 MXU path)
    h1 = h1.astype(w2_ref.dtype)
    h2 = jnp.dot(h1, w2_ref[...], preferred_element_type=jnp.float32)
    h2 = jnp.maximum(h2 + b2_ref[...].astype(jnp.float32), 0.0)

    # Layer 3, computed transposed so the output tile is lane-dense:
    #   (out, hidden) x (TB, hidden)^T -> (out, TB)
    h2 = h2.astype(w3t_ref.dtype)
    h3t = lax.dot_general(
        w3t_ref[...], h2,
        dimension_numbers=(((1,), (1,)), ((), ())),
        preferred_element_type=jnp.float32,
    ) + b3t_ref[...].astype(jnp.float32)

    ot_ref[...] = (jnp.tanh(h3t) * 3.0).astype(ot_ref.dtype)


def actor_forward(x, params, *, tb=None):
    """Fused Actor forward pass.

    x: (B, input_size). Weights may be f32 or bf16; output is always f32.
    tb: batch tile (lane dim of the transposed output) — multiple of 128.
        Sweep per generation for very large batches (v7x has 64 MiB VMEM);
        the default (<=512) is safe everywhere.
    """
    w1, b1, w2, b2, w3t, b3t = params
    B, in_size = x.shape
    hidden = w1.shape[1]
    out_size = w3t.shape[0]

    if tb is None:
        tb = min(_round_up(B, 128), 512)
    b_pad = _round_up(B, tb)

    # Feed x in the weights' compute dtype (bf16 halves the HBM stream that
    # actually scales with batch); padded rows are zeros and sliced off below.
    x_p = x.astype(w1.dtype)
    if b_pad != B:
        x_p = jnp.pad(x_p, ((0, b_pad - B), (0, 0)))

    grid = (b_pad // tb,)

    weight_bytes = sum(int(p.size) * p.dtype.itemsize for p in params)
    cost = pl.CostEstimate(
        flops=2 * b_pad * (in_size * hidden + hidden * hidden + hidden * out_size),
        transcendentals=b_pad * out_size,
        bytes_accessed=int(x_p.size) * x_p.dtype.itemsize
        + weight_bytes
        + b_pad * out_size * 4,
    )

    def resident(shape):
        # Same block index every grid step -> stays resident in VMEM.
        return pl.BlockSpec(shape, lambda b: (0,) * len(shape))

    out_t = pl.pallas_call(
        actor_kernel,
        out_shape=jax.ShapeDtypeStruct((out_size, b_pad), jnp.float32),
        grid=grid,
        in_specs=[
            pl.BlockSpec((tb, in_size), lambda b: (b, 0)),   # streamed activations
            resident(w1.shape), resident(b1.shape),
            resident(w2.shape), resident(b2.shape),
            resident(w3t.shape), resident(b3t.shape),
        ],
        # Lane-dense output: batch on the 128-lane axis.
        out_specs=pl.BlockSpec((out_size, tb), lambda b: (0, b)),
        compiler_params=pltpu.CompilerParams(
            dimension_semantics=("parallel",),
        ),
        cost_estimate=cost,
    )(x_p, w1, b1, w2, b2, w3t, b3t)

    # Transpose back to (B, out_size) and drop batch padding.
    return out_t[:, :B].T


def init_actor_params(key, input_size, hidden_size, output_size, dtype=jnp.float32):
    """Deterministic init mimicking PyTorch nn.Linear default (uniform +-1/sqrt(fan_in)).

    w1, w2: (in, out) layout; w3: (out, in) PyTorch layout; b3: (out, 1).
    """
    ks = jax.random.split(key, 6)

    def linear(kw, kb, fan_in, fan_out):
        bound = 1.0 / jnp.sqrt(jnp.float32(fan_in))
        w = jax.random.uniform(kw, (fan_in, fan_out), jnp.float32, -bound, bound)
        b = jax.random.uniform(kb, (1, fan_out), jnp.float32, -bound, bound)
        return w, b

    w1, b1 = linear(ks[0], ks[1], input_size, hidden_size)
    w2, b2 = linear(ks[2], ks[3], hidden_size, hidden_size)
    w3, b3 = linear(ks[4], ks[5], hidden_size, output_size)
    w3t = w3.T                      # (out, hidden)
    b3t = b3.T                      # (out, 1)
    return tuple(p.astype(dtype) for p in (w1, b1, w2, b2, w3t, b3t))


def actor_reference(x, params):
    """Plain-JAX f32 reference for correctness checks."""
    w1, b1, w2, b2, w3t, b3t = (p.astype(jnp.float32) for p in params)
    h = jnp.maximum(x @ w1 + b1, 0.0)
    h = jnp.maximum(h @ w2 + b2, 0.0)
    return jnp.tanh(h @ w3t.T + b3t.T) * 3.0


if __name__ == "__main__":
    input_size = 16
    hidden_size = 64
    output_size = 8
    batch = 8

    key = jax.random.PRNGKey(0)
    k_params, k_x = jax.random.split(key)

    params_f32 = init_actor_params(k_params, input_size, hidden_size, output_size)
    x = jax.random.normal(k_x, (batch, input_size), dtype=jnp.float32)
    ref = actor_reference(x, params_f32)

    # f32 path (matches PyTorch semantics exactly).
    out = jax.block_until_ready(actor_forward(x, params_f32))
    assert out.shape == (batch, output_size)
    assert jnp.allclose(out, ref, atol=1e-5, rtol=1e-5), "f32 mismatch vs reference"

    # bf16 weight/activation-stream path (MXU-native on v6e/v7x); looser tolerance.
    params_bf16 = jax.tree_util.tree_map(lambda p: p.astype(jnp.bfloat16), params_f32)
    out_bf16 = jax.block_until_ready(actor_forward(x, params_bf16))
    assert out_bf16.shape == (batch, output_size)
    assert jnp.allclose(out_bf16.astype(jnp.float32), ref, atol=0.15, rtol=0.1), \
        "bf16 mismatch vs f32 reference"

    print("KERNEL_OK")
</pallas_src>

<mosaic_0001>
module attributes {stable_mosaic.version = 11 : i64} {
  func.func @actor_kernel(%arg0: i32, %arg1: memref<128x16xf32, #tpu.memory_space<vmem>>, %arg2: memref<16x64xf32, #tpu.memory_space<vmem>>, %arg3: memref<1x64xf32, #tpu.memory_space<vmem>>, %arg4: memref<64x64xf32, #tpu.memory_space<vmem>>, %arg5: memref<1x64xf32, #tpu.memory_space<vmem>>, %arg6: memref<8x64xf32, #tpu.memory_space<vmem>>, %arg7: memref<8x1xf32, #tpu.memory_space<vmem>>, %arg8: memref<8x128xf32, #tpu.memory_space<vmem>>) attributes {dimension_semantics = [#tpu.dimension_semantics<parallel>], iteration_bounds = array<i64: 1>, scalar_prefetch = 0 : i64, scratch_operands = 0 : i64, tpu.core_type = #tpu.core_type<tc>, window_params = [{transform_indices = @transform_0, window_bounds = array<i64: 128, 16>}, {pipeline_mode = #tpu.pipeline_mode<synchronous>, transform_indices = @transform_1, window_bounds = array<i64: 16, 64>}, {pipeline_mode = #tpu.pipeline_mode<synchronous>, transform_indices = @transform_2, window_bounds = array<i64: 1, 64>}, {pipeline_mode = #tpu.pipeline_mode<synchronous>, transform_indices = @transform_3, window_bounds = array<i64: 64, 64>}, {pipeline_mode = #tpu.pipeline_mode<synchronous>, transform_indices = @transform_4, window_bounds = array<i64: 1, 64>}, {pipeline_mode = #tpu.pipeline_mode<synchronous>, transform_indices = @transform_5, window_bounds = array<i64: 8, 64>}, {pipeline_mode = #tpu.pipeline_mode<synchronous>, transform_indices = @transform_6, window_bounds = array<i64: 8, 1>}, {transform_indices = @transform_7, window_bounds = array<i64: 8, 128>}]} {
    %c0 = arith.constant 0 : index
    %c0_0 = arith.constant 0 : index
    %0 = vector.load %arg1[%c0, %c0_0] : memref<128x16xf32, #tpu.memory_space<vmem>>, vector<128x16xf32>
    %c0_1 = arith.constant 0 : index
    %c0_2 = arith.constant 0 : index
    %1 = vector.load %arg2[%c0_1, %c0_2] : memref<16x64xf32, #tpu.memory_space<vmem>>, vector<16x64xf32>
    %cst = arith.constant dense<0.000000e+00> : vector<128x64xf32>
    %2 = tpu.matmul %0, %1, %cst {dimension_numbers = #tpu.dot_dimension_numbers<[1], [0], [0], [1], [0, 0, 1, 1], [], []>} : vector<128x16xf32>, vector<16x64xf32>, vector<128x64xf32> -> vector<128x64xf32>
    %c0_3 = arith.constant 0 : index
    %c0_4 = arith.constant 0 : index
    %3 = vector.load %arg3[%c0_3, %c0_4] : memref<1x64xf32, #tpu.memory_space<vmem>>, vector<1x64xf32>
    %4 = vector.broadcast %3 : vector<1x64xf32> to vector<128x64xf32>
    %5 = arith.addf %2, %4 : vector<128x64xf32>
    %cst_5 = arith.constant 0.000000e+00 : f32
    %6 = vector.broadcast %cst_5 : f32 to vector<128x64xf32>
    %7 = arith.maximumf %5, %6 : vector<128x64xf32>
    %c0_6 = arith.constant 0 : index
    %c0_7 = arith.constant 0 : index
    %8 = vector.load %arg4[%c0_6, %c0_7] : memref<64x64xf32, #tpu.memory_space<vmem>>, vector<64x64xf32>
    %cst_8 = arith.constant dense<0.000000e+00> : vector<128x64xf32>
    %9 = tpu.matmul %7, %8, %cst_8 {dimension_numbers = #tpu.dot_dimension_numbers<[1], [0], [0], [1], [0, 0, 1, 1], [], []>} : vector<128x64xf32>, vector<64x64xf32>, vector<128x64xf32> -> vector<128x64xf32>
    %c0_9 = arith.constant 0 : index
    %c0_10 = arith.constant 0 : index
    %10 = vector.load %arg5[%c0_9, %c0_10] : memref<1x64xf32, #tpu.memory_space<vmem>>, vector<1x64xf32>
    %11 = vector.broadcast %10 : vector<1x64xf32> to vector<128x64xf32>
    %12 = arith.addf %9, %11 : vector<128x64xf32>
    %cst_11 = arith.constant 0.000000e+00 : f32
    %13 = vector.broadcast %cst_11 : f32 to vector<128x64xf32>
    %14 = arith.maximumf %12, %13 : vector<128x64xf32>
    %c0_12 = arith.constant 0 : index
    %c0_13 = arith.constant 0 : index
    %15 = vector.load %arg6[%c0_12, %c0_13] : memref<8x64xf32, #tpu.memory_space<vmem>>, vector<8x64xf32>
    %cst_14 = arith.constant dense<0.000000e+00> : vector<8x128xf32>
    %16 = tpu.matmul %15, %14, %cst_14 {dimension_numbers = #tpu.dot_dimension_numbers<[1], [1], [0], [0], [0, 0, 1, 0], [], []>} : vector<8x64xf32>, vector<128x64xf32>, vector<8x128xf32> -> vector<8x128xf32>
    %c0_15 = arith.constant 0 : index
    %c0_16 = arith.constant 0 : index
    %17 = vector.load %arg7[%c0_15, %c0_16] : memref<8x1xf32, #tpu.memory_space<vmem>>, vector<8x1xf32>
    %18 = vector.broadcast %17 : vector<8x1xf32> to vector<8x128xf32>
    %19 = arith.addf %16, %18 : vector<8x128xf32>
    %20 = math.tanh %19 : vector<8x128xf32>
    %cst_17 = arith.constant 3.000000e+00 : f32
    %21 = vector.broadcast %cst_17 : f32 to vector<8x128xf32>
    %22 = arith.mulf %20, %21 : vector<8x128xf32>
    %c0_18 = arith.constant 0 : index
    %c0_19 = arith.constant 0 : index
    %23 = vector.load %arg8[%c0_18, %c0_19] : memref<8x128xf32, #tpu.memory_space<vmem>>, vector<8x128xf32>
    tpu.vector_store %arg8[%c0_18, %c0_19], %22 {strides = array<i32>} : memref<8x128xf32, #tpu.memory_space<vmem>>, vector<8x128xf32>,
    return
  }
  func.func @transform_0(%arg0: i32) -> (i32, i32) {
    %c0_i32 = arith.constant 0 : i32
    %c0_i32_0 = arith.constant 0 : i32
    return %arg0, %c0_i32 : i32, i32
  }
  func.func @transform_1(%arg0: i32) -> (i32, i32) {
    %c0_i32 = arith.constant 0 : i32
    %c0_i32_0 = arith.constant 0 : i32
    %c0_i32_1 = arith.constant 0 : i32
    return %c0_i32, %c0_i32_0 : i32, i32
  }
  func.func @transform_2(%arg0: i32) -> (i32, i32) {
    %c0_i32 = arith.constant 0 : i32
    %c0_i32_0 = arith.constant 0 : i32
    %c0_i32_1 = arith.constant 0 : i32
    return %c0_i32, %c0_i32_0 : i32, i32
  }
  func.func @transform_3(%arg0: i32) -> (i32, i32) {
    %c0_i32 = arith.constant 0 : i32
    %c0_i32_0 = arith.constant 0 : i32
    %c0_i32_1 = arith.constant 0 : i32
    return %c0_i32, %c0_i32_0 : i32, i32
  }
  func.func @transform_4(%arg0: i32) -> (i32, i32) {
    %c0_i32 = arith.constant 0 : i32
    %c0_i32_0 = arith.constant 0 : i32
    %c0_i32_1 = arith.constant 0 : i32
    return %c0_i32, %c0_i32_0 : i32, i32
  }
  func.func @transform_5(%arg0: i32) -> (i32, i32) {
    %c0_i32 = arith.constant 0 : i32
    %c0_i32_0 = arith.constant 0 : i32
    %c0_i32_1 = arith.constant 0 : i32
    return %c0_i32, %c0_i32_0 : i32, i32
  }
  func.func @transform_6(%arg0: i32) -> (i32, i32) {
    %c0_i32 = arith.constant 0 : i32
    %c0_i32_0 = arith.constant 0 : i32
    %c0_i32_1 = arith.constant 0 : i32
    return %c0_i32, %c0_i32_0 : i32, i32
  }
  func.func @transform_7(%arg0: i32) -> (i32, i32) {
    %c0_i32 = arith.constant 0 : i32
    %c0_i32_0 = arith.constant 0 : i32
    return %c0_i32, %arg0 : i32, i32
  }
}

</mosaic_0001>

<bundles_post_ra>
// kernel: tpu_custom_call.1
= control target key start
LH: loop header
LB: loop body
LE: loop exit
PB: predicated region body
PF: predicated region fallthrough
CT: control target
= control target key end

     0   :  { %vm52_vm0 = vcmask 130048   ;;  %s1086_s0 = inlined_call_operand.vmem [shape: f32[128,16], index: 0, kind: input, shape index: {}]   ;;  %s1087_s1 = inlined_call_operand.vmem [shape: f32[16,64], index: 1, kind: input, shape index: {}]   ;;  %s1088_s2 = inlined_call_operand.vmem [shape: f32[1,64], index: 2, kind: input, shape index: {}]   ;;  %s1089_s3 = inlined_call_operand.vmem [shape: f32[64,64], index: 3, kind: input, shape index: {}]   ;;  %s1090_s4 = inlined_call_operand.vmem [shape: f32[1,64], index: 4, kind: input, shape index: {}]   ;;  %s1091_s5 = inlined_call_operand.vmem [shape: f32[8,64], index: 5, kind: input, shape index: {}]   ;;  %s1092_s6 = inlined_call_operand.vmem [shape: f32[8,1], index: 6, kind: input, shape index: {}]   ;;  %s1093_s7 = inlined_call_operand.hbm [shape: f32[8,128], index: 7, kind: output, shape index: {}]  }
   0x1   :  { %v44_v0 = vld [vmem:[%s1087_s1 + $0x8] sm:$0xff]  ;;  %v43_v1 = vld [vmem:[%s1087_s1] sm:$0xff]  ;;  %v29_v4 = vld [vmem:[%s1086_s0 + $0x10] sm:$0xff] }
   0x2   :  { %v27_v2 = vld [vmem:[%s1086_s0] sm:$0xff]  ;;  %742 = vmatprep.subr.mxu1 %v44_v0  ;;  %v28_v3 = vld [vmem:[%s1086_s0 + $0x8] sm:$0xff]  ;;  %v30_v5 = vld [vmem:[%s1086_s0 + $0x18] sm:$0xff] }
   0x3   :  { %746 = vmatprep.mubr.msk.f32.mxu1 %vm52_vm0, %v27_v2  ;;  %743 = vmatpush3.msra.mxu1 %v44_v0  ;;  %v269_v6 = vld [vmem:[%s1089_s3 + $0x38] sm:$0xff]  ;;  %v268_v7 = vld [vmem:[%s1089_s3 + $0x30] sm:$0xff]  ;;  %v31_v8 = vld [vmem:[%s1086_s0 + $0x20] sm:$0xff] }
   0x4   :  { %744 = vmatprep.subr.mxu1 %v43_v1  ;;  %v267_v9 = vld [vmem:[%s1089_s3 + $0x28] sm:$0xff] }
   0x5   :  { %745 = vmatpush3.msra.mxu1 %v43_v1 }
   0x6   :  { %747 = vmatmul.mubr.msk.f32.vlgmr.msra.gmra.mxu1 %vm52_vm0, %v28_v3  ;;  %770 = vmatprep.subr.mxu1 %v269_v6 }
   0x7   :  { %749 = vmatprep.mubr.msk.f32.mxu1 %vm52_vm0, %v29_v4  ;;  %771 = vmatpush3.msra.mxu1 %v269_v6 }
   0x8   :  { %12 = vsyncpa [#allocation3], 0  ;;  %772 = vmatprep.subr.mxu1 %v268_v7  ;;  %v32_v10 = vld [vmem:[%s1086_s0 + $0x28] sm:$0xff]  ;;  %v266_v11 = vld [vmem:[%s1089_s3 + $0x20] sm:$0xff]  ;;  %vm277_vm1 = vcmask 523264   ;;  %vm875_vm2 = vmmov 0  }
   0x9   :  { %773 = vmatpush3.msra.mxu1 %v268_v7  ;;  %v33_v12 = vld [vmem:[%s1086_s0 + $0x30] sm:$0xff]  ;;  %v265_v13 = vld [vmem:[%s1089_s3 + $0x18] sm:$0xff]  ;;  %v35_v16 = vld [vmem:[%s1086_s0 + $0x40] sm:$0xff]  ;;  %s877_s8 = smov [#allocation2]  }
   0xa   :  { %750 = vmatmul.mubr.msk.f32.gmra.mxu1 %vm52_vm0, %v30_v5  ;;  %774 = vmatprep.subr.mxu1 %v267_v9  ;;  %v34_v14 = vld [vmem:[%s1086_s0 + $0x38] sm:$0xff]  ;;  %v264_v15 = vld [vmem:[%s1089_s3 + $0x10] sm:$0xff]  ;;  %v263_v17 = vld [vmem:[%s1089_s3 + $0x8] sm:$0xff]  ;;  %s624_s9 = sshll.u32 %s877_s8, 4  ;;  %s625_s9 = int_to_ptr.vmem [resolvable:$true] %s624_s9 }
   0xb   :  { %752 = vmatprep.mubr.msk.f32.mxu1 %vm52_vm0, %v31_v8  ;;  %775 = vmatpush3.msra.mxu1 %v267_v9  ;;  %v36_v18 = vld [vmem:[%s1086_s0 + $0x48] sm:$0xff]  ;;  %v37_v19 = vld [vmem:[%s1086_s0 + $0x50] sm:$0xff]  ;;  %v38_v20 = vld [vmem:[%s1086_s0 + $0x58] sm:$0xff]  ;;  %s852_s10 = scalar_lea.vmem %s625_s9, 128  ;;  %p857_p1 = scmp.lt.s32.totalorder %s625_s9, %s625_s9 }
   0xc   :  { %776 = vmatprep.subr.mxu1 %v266_v11  ;;  %v39_v21 = vld [vmem:[%s1086_s0 + $0x60] sm:$0xff]  ;;  %v40_v22 = vld [vmem:[%s1086_s0 + $0x68] sm:$0xff]  ;;  %v41_v23 = vld [vmem:[%s1086_s0 + $0x70] sm:$0xff]  ;;  %p853_p0 = scmp.ne.s32.totalorder %s625_s9, %s852_s10  ;;  %p858_p2 = scmp.lt.s32.totalorder %s852_s10, %s852_s10 }
   0xd   :  { %777 = vmatpush3.msra.mxu1 %v266_v11  ;;  %v42_v24 = vld [vmem:[%s1086_s0 + $0x78] sm:$0xff]  ;;  %v262_v25 = vld [vmem:[%s1089_s3] sm:$0xff]  ;;  %v874_v11 = vmov 0.0  }
   0xe   :  { %753 = vmatmul.mubr.msk.f32.gmra.mxu1 %vm52_vm0, %v32_v10  ;;  %778 = vmatprep.subr.mxu1 %v265_v13  ;;  %v632_v26 = vld [vmem:[%s1088_s2] ss:$0 sm:$0xff]  ;;  %p859_p3 = por %p858_p2, %p857_p1 }
   0xf   :  { %755 = vmatprep.mubr.msk.f32.mxu1 %vm52_vm0, %v33_v12  ;;  %779 = vmatpush3.msra.mxu1 %v265_v13  ;;  %v488_v12 = vld [vmem:[%s1092_s6] sm:$0xff]  ;;  %v876_v13 = vmov 0  }
  0x10   :  { %780 = vmatprep.subr.mxu1 %v264_v15  ;;  %810 = vmatprep.subr.mxu0 %v874_v11  ;;  %p860_p4 = pnand %p859_p3, %p853_p0 }
  0x11   :  { %781 = vmatpush3.msra.mxu1 %v264_v15  ;;  %842 = vmatprep.mubr.msk.f32.mxu0 %vm875_vm2, %v874_v11 }
  0x12   :  { %756 = vmatmul.mubr.msk.f32.gmra.mxu1 %vm52_vm0, %v34_v14  ;;  %782 = vmatprep.subr.mxu1 %v263_v17 }
  0x13   :  { %758 = vmatprep.mubr.msk.f32.mxu1 %vm52_vm0, %v35_v16  ;;  %783 = vmatpush3.msra.mxu1 %v263_v17 }
  0x14   :  { %784 = vmatprep.subr.mxu1 %v262_v25  ;;  %849 = vset.pattern.permute.xlu0 %v876_v13 }
  0x15   :  { %785 = vmatpush3.msra.mxu1 %v262_v25  ;;  %491 = vperm.xlu0 %849, %v488_v12  }
  0x16   :  { %759 = vmatmul.mubr.msk.f32.gmra.mxu1 %vm52_vm0, %v36_v18 }
  0x17   :  { %761 = vmatprep.mubr.msk.f32.mxu1 %vm52_vm0, %v37_v19 }
  0x1a   :  { %762 = vmatmul.mubr.msk.f32.gmra.mxu1 %vm52_vm0, %v38_v20 }
  0x1b   :  { %764 = vmatprep.mubr.msk.f32.mxu1 %vm52_vm0, %v39_v21 }
  0x1e   :  { %765 = vmatmul.mubr.msk.f32.gmra.mxu1 %vm52_vm0, %v40_v22 }
  0x1f   :  { %767 = vmatprep.mubr.msk.f32.mxu1 %vm52_vm0, %v41_v23 }
  0x22   :  { %768 = vmatmul.mubr.msk.f32.gmra.mxu1 %vm52_vm0, %v42_v24 }
  0xc6   :  { %v748_v27 = vpop.f32.mrf.mxu1 }
  0xc7   :  { %v173_v28 = vadd.f32 %v748_v27, %v632_v26 }
  0xc8   :  { %v167_v29 = vpop.f32.mrf.mxu1 }
  0xc9   :  { %v168_v30 = vadd.f32 %v632_v26, %v167_v29  ;;  %v247_v33 = vmax.f32 %v173_v28, 0.0  ;;  %v649_v28 = vld [vmem:[%s1090_s4] ss:$0 sm:$0xff] }
  0xca   :  { %v751_v31 = vpop.f32.mrf.mxu1 }
  0xcb   :  { %v246_v32 = vmax.f32 %v168_v30, 0.0  ;;  %v183_v34 = vadd.f32 %v751_v31, %v632_v26 }
  0xcc   :  { %v177_v35 = vpop.f32.mrf.mxu1 }
  0xcd   :  { %v178_v36 = vadd.f32 %v632_v26, %v177_v35  ;;  %786 = vmatprep.mubr.msk.f32.mxu1 %vm277_vm1, %v246_v32  ;;  %v249_v39 = vmax.f32 %v183_v34, 0.0 }
  0xce   :  { %v754_v37 = vpop.f32.mrf.mxu1  ;;  %787 = vmatmul.mubr.msk.f32.vlgmr.msra.gmra.mxu1 %vm277_vm1, %v247_v33 }
  0xcf   :  { %v248_v38 = vmax.f32 %v178_v36, 0.0  ;;  %v193_v40 = vadd.f32 %v754_v37, %v632_v26 }
  0xd0   :  { %v187_v41 = vpop.f32.mrf.mxu1 }
  0xd1   :  { %v188_v42 = vadd.f32 %v632_v26, %v187_v41  ;;  %789 = vmatprep.mubr.msk.f32.mxu1 %vm277_vm1, %v248_v38  ;;  %v251_v45 = vmax.f32 %v193_v40, 0.0 }
  0xd2   :  { %v757_v43 = vpop.f32.mrf.mxu1  ;;  %790 = vmatmul.mubr.msk.f32.gmra.mxu1 %vm277_vm1, %v249_v39 }
  0xd3   :  { %v250_v44 = vmax.f32 %v188_v42, 0.0  ;;  %v203_v46 = vadd.f32 %v757_v43, %v632_v26 }
  0xd4   :  { %v197_v47 = vpop.f32.mrf.mxu1 }
  0xd5   :  { %v198_v48 = vadd.f32 %v632_v26, %v197_v47  ;;  %792 = vmatprep.mubr.msk.f32.mxu1 %vm277_vm1, %v250_v44  ;;  %v253_v51 = vmax.f32 %v203_v46, 0.0 }
  0xd6   :  { %v760_v49 = vpop.f32.mrf.mxu1  ;;  %793 = vmatmul.mubr.msk.f32.gmra.mxu1 %vm277_vm1, %v251_v45 }
  0xd7   :  { %v252_v50 = vmax.f32 %v198_v48, 0.0  ;;  %v213_v52 = vadd.f32 %v760_v49, %v632_v26 }
  0xd8   :  { %v207_v53 = vpop.f32.mrf.mxu1 }
  0xd9   :  { %v208_v54 = vadd.f32 %v632_v26, %v207_v53  ;;  %795 = vmatprep.mubr.msk.f32.mxu1 %vm277_vm1, %v252_v50  ;;  %v255_v57 = vmax.f32 %v213_v52, 0.0 }
  0xda   :  { %v763_v55 = vpop.f32.mrf.mxu1  ;;  %796 = vmatmul.mubr.msk.f32.gmra.mxu1 %vm277_vm1, %v253_v51 }
  0xdb   :  { %v254_v56 = vmax.f32 %v208_v54, 0.0  ;;  %v223_v58 = vadd.f32 %v763_v55, %v632_v26 }
  0xdc   :  { %v217_v59 = vpop.f32.mrf.mxu1 }
  0xdd   :  { %v218_v60 = vadd.f32 %v632_v26, %v217_v59  ;;  %798 = vmatprep.mubr.msk.f32.mxu1 %vm277_vm1, %v254_v56  ;;  %v257_v63 = vmax.f32 %v223_v58, 0.0 }
  0xde   :  { %v766_v61 = vpop.f32.mrf.mxu1  ;;  %799 = vmatmul.mubr.msk.f32.gmra.mxu1 %vm277_vm1, %v255_v57 }
  0xdf   :  { %v256_v62 = vmax.f32 %v218_v60, 0.0  ;;  %v233_v0 = vadd.f32 %v766_v61, %v632_v26 }
  0xe0   :  { %v227_v1 = vpop.f32.mrf.mxu1 }
  0xe1   :  { %v228_v2 = vadd.f32 %v632_v26, %v227_v1  ;;  %801 = vmatprep.mubr.msk.f32.mxu1 %vm277_vm1, %v256_v62  ;;  %v259_v5 = vmax.f32 %v233_v0, 0.0  ;;  %v492_v0 = vpop.permute.xlu0 %491 }
  0xe2   :  { %v769_v3 = vpop.f32.mrf.mxu1  ;;  %802 = vmatmul.mubr.msk.f32.gmra.mxu1 %vm277_vm1, %v257_v63  ;;  %v487_v63 = vld [vmem:[%s1091_s5] sm:$0xff] }
  0xe3   :  { %v258_v4 = vmax.f32 %v228_v2, 0.0  ;;  %v243_v6 = vadd.f32 %v769_v3, %v632_v26 }
  0xe4   :  { %v237_v7 = vpop.f32.mrf.mxu1 }
  0xe5   :  { %v238_v8 = vadd.f32 %v632_v26, %v237_v7  ;;  %804 = vmatprep.mubr.msk.f32.mxu1 %vm277_vm1, %v258_v4  ;;  %v261_v10 = vmax.f32 %v243_v6, 0.0 }
  0xe6   :  { %805 = vmatmul.mubr.msk.f32.gmra.mxu1 %vm277_vm1, %v259_v5 }
  0xe7   :  { %v260_v9 = vmax.f32 %v238_v8, 0.0 }
  0xe9   :  { %807 = vmatprep.mubr.msk.f32.mxu1 %vm277_vm1, %v260_v9 }
  0xea   :  { %808 = vmatmul.mubr.msk.f32.gmra.mxu1 %vm277_vm1, %v261_v10 }
 0x18e   :  { %v1036_v14 = vpop.f32.mrf.mxu1 }
 0x18f   :  { %v398_v58 = vadd.f32 %v1036_v14, %v649_v28 }
 0x190   :  { %v1038_v15 = vpop.f32.mrf.mxu1 }
 0x191   :  { %v472_v60 = vmax.f32 %v398_v58, 0.0  ;;  %v393_v61 = vadd.f32 %v649_v28, %v1038_v15 }
 0x192   :  { %v791_v16 = vpop.f32.mrf.mxu1 }
 0x193   :  { %v408_v54 = vadd.f32 %v791_v16, %v649_v28  ;;  %v471_v62 = vmax.f32 %v393_v61, 0.0 }
 0x194   :  { %v1040_v17 = vpop.f32.mrf.mxu1 }
 0x195   :  { %v474_v56 = vmax.f32 %v408_v54, 0.0  ;;  %v403_v57 = vadd.f32 %v649_v28, %v1040_v17 }
 0x196   :  { %v794_v18 = vpop.f32.mrf.mxu1 }
 0x197   :  { %v418_v50 = vadd.f32 %v794_v18, %v649_v28  ;;  %v473_v59 = vmax.f32 %v403_v57, 0.0 }
 0x198   :  { %v412_v19 = vpop.f32.mrf.mxu1 }
 0x199   :  { %v476_v52 = vmax.f32 %v418_v50, 0.0  ;;  %v413_v53 = vadd.f32 %v649_v28, %v412_v19 }
 0x19a   :  { %v797_v20 = vpop.f32.mrf.mxu1 }
 0x19b   :  { %v428_v46 = vadd.f32 %v797_v20, %v649_v28  ;;  %v475_v55 = vmax.f32 %v413_v53, 0.0 }
 0x19c   :  { %v422_v21 = vpop.f32.mrf.mxu1 }
 0x19d   :  { %v478_v48 = vmax.f32 %v428_v46, 0.0  ;;  %v423_v49 = vadd.f32 %v649_v28, %v422_v21 }
 0x19e   :  { %v800_v22 = vpop.f32.mrf.mxu1 }
 0x19f   :  { %v438_v42 = vadd.f32 %v800_v22, %v649_v28  ;;  %v477_v51 = vmax.f32 %v423_v49, 0.0 }
 0x1a0   :  { %v432_v23 = vpop.f32.mrf.mxu1 }
 0x1a1   :  { %v480_v44 = vmax.f32 %v438_v42, 0.0  ;;  %v433_v45 = vadd.f32 %v649_v28, %v432_v23 }
 0x1a2   :  { %v803_v24 = vpop.f32.mrf.mxu1 }
 0x1a3   :  { %v448_v38 = vadd.f32 %v803_v24, %v649_v28  ;;  %v479_v47 = vmax.f32 %v433_v45, 0.0 }
 0x1a4   :  { %v442_v25 = vpop.f32.mrf.mxu1 }
 0x1a5   :  { %v482_v40 = vmax.f32 %v448_v38, 0.0  ;;  %v443_v41 = vadd.f32 %v649_v28, %v442_v25 }
 0x1a6   :  { %v806_v26 = vpop.f32.mrf.mxu1 }
 0x1a7   :  { %v458_v34 = vadd.f32 %v806_v26, %v649_v28  ;;  %v481_v43 = vmax.f32 %v443_v41, 0.0 }
 0x1a8   :  { %v452_v27 = vpop.f32.mrf.mxu1 }
 0x1a9   :  { %v484_v36 = vmax.f32 %v458_v34, 0.0  ;;  %v453_v37 = vadd.f32 %v649_v28, %v452_v27 }
 0x1aa   :  { %v809_v29 = vpop.f32.mrf.mxu1 }
 0x1ab   :  { %v468_v30 = vadd.f32 %v809_v29, %v649_v28  ;;  %v483_v39 = vmax.f32 %v453_v37, 0.0 }
 0x1ac   :  { %v462_v31 = vpop.f32.mrf.mxu1 }
 0x1ad   :  { %v486_v32 = vmax.f32 %v468_v30, 0.0  ;;  %v463_v33 = vadd.f32 %v649_v28, %v462_v31 }
 0x1af   :  { %811 = vmatpush3.xpose.msk.msra.mxu0 %vm277_vm1, %v486_v32  ;;  %v485_v35 = vmax.f32 %v463_v33, 0.0 }
 0x1b0   :  { %812 = vmatprep.subr.mxu0 %v874_v11 }
 0x1b3   :  { %813 = vmatpush3.xpose.msk.msra.mxu0 %vm277_vm1, %v485_v35 }
 0x1b4   :  { %814 = vmatprep.subr.mxu0 %v874_v11 }
 0x1b7   :  { %815 = vmatpush3.xpose.msk.msra.mxu0 %vm277_vm1, %v484_v36 }
 0x1b8   :  { %816 = vmatprep.subr.mxu0 %v874_v11 }
 0x1bb   :  { %817 = vmatpush3.xpose.msk.msra.mxu0 %vm277_vm1, %v483_v39 }
 0x1bc   :  { %818 = vmatprep.subr.mxu0 %v874_v11 }
 0x1bf   :  { %819 = vmatpush3.xpose.msk.msra.mxu0 %vm277_vm1, %v482_v40 }
 0x1c0   :  { %820 = vmatprep.subr.mxu0 %v874_v11 }
 0x1c3   :  { %821 = vmatpush3.xpose.msk.msra.mxu0 %vm277_vm1, %v481_v43 }
 0x1c4   :  { %822 = vmatprep.subr.mxu0 %v874_v11 }
 0x1c7   :  { %823 = vmatpush3.xpose.msk.msra.mxu0 %vm277_vm1, %v480_v44 }
 0x1c8   :  { %824 = vmatprep.subr.mxu0 %v874_v11 }
 0x1cb   :  { %825 = vmatpush3.xpose.msk.msra.mxu0 %vm277_vm1, %v479_v47 }
 0x1cc   :  { %826 = vmatprep.subr.mxu0 %v874_v11 }
 0x1cf   :  { %827 = vmatpush3.xpose.msk.msra.mxu0 %vm277_vm1, %v478_v48 }
 0x1d0   :  { %828 = vmatprep.subr.mxu0 %v874_v11 }
 0x1d3   :  { %829 = vmatpush3.xpose.msk.msra.mxu0 %vm277_vm1, %v477_v51 }
 0x1d4   :  { %830 = vmatprep.subr.mxu0 %v874_v11 }
 0x1d7   :  { %831 = vmatpush3.xpose.msk.msra.mxu0 %vm277_vm1, %v476_v52 }
 0x1d8   :  { %832 = vmatprep.subr.mxu0 %v874_v11 }
 0x1db   :  { %833 = vmatpush3.xpose.msk.msra.mxu0 %vm277_vm1, %v475_v55 }
 0x1dc   :  { %834 = vmatprep.subr.mxu0 %v874_v11 }
 0x1df   :  { %835 = vmatpush3.xpose.msk.msra.mxu0 %vm277_vm1, %v474_v56 }
 0x1e0   :  { %836 = vmatprep.subr.mxu0 %v874_v11 }
 0x1e3   :  { %837 = vmatpush3.xpose.msk.msra.mxu0 %vm277_vm1, %v473_v59 }
 0x1e4   :  { %838 = vmatprep.subr.mxu0 %v874_v11 }
 0x1e7   :  { %839 = vmatpush3.xpose.msk.msra.mxu0 %vm277_vm1, %v472_v60 }
 0x1e8   :  { %840 = vmatprep.subr.mxu0 %v874_v11 }
 0x1eb   :  { %841 = vmatpush3.xpose.msk.msra.mxu0 %vm277_vm1, %v471_v62 }
 0x1ee   :  { %843 = vmatmul.mubr.msk.f32.vlgmr.msra.gmra.mxu0 %vm277_vm1, %v487_v63 }
 0x2ae   :  { %v611_v1 = vpop.f32.mrf.mxu0 }
 0x2af   :  { %v612_v2 = vadd.f32 %v611_v1, %v492_v0 }
 0x2b0   :  { %v844_v3 = vpop.f32.mrf.mxu0 }
 0x2b1   :  { %850 = vtanh.f32 %v612_v2 }
 0x2be   :  { %v851_v4 = vpop.eup %850 }
 0x2bf   :  { %v616_v5 = vmul.f32 3.0, %v851_v4 }
 0x2c1   :  { %617 = vst [vmem:[#allocation2] sm:$0xff] %v616_v5 }
 0x2c2   :  { %863 = shalt.err (!%p860_p4)
}
 0x2c3   :  { %627 = dma.vmem_to_hbm [thread:$0]  %s625_s9, 128, %s1093_s7, [#allocation3]  }
 0x2c4   :  { %872 = dma.done.wait [#allocation3], 128  }
 0x2c5   :  { %873 = vsyncadd [#allocation3], 4294967168 }
 0x2c6   :  { %631 = vsyncpa [#allocation3], 1 }

</bundles_post_ra>
